<compile_context>
chip_gen: v6e
topology: v6e:2x2x1
jax: 0.10.0
libtpu: 0.0.40
codegen_flags: <defaults>
</compile_context>

<pallas_src>
import functools

import jax
import jax.numpy as jnp
from jax import lax
from jax.experimental import pallas as pl
from jax.experimental.pallas import tpu as pltpu


def _pick_tile(dim, candidates):
    """Largest candidate that evenly divides `dim`, else the full extent."""
    for c in candidates:
        if dim % c == 0:
            return c
    return dim


# ----------------------------------------------------------------------------
# Kernel 1: knn_interpolate (k = 3), torch_geometric semantics per batch:
#   w_j = 1 / clamp(d_j^2, 1e-16) over the 3 nearest same-batch centroids
#   y_i = sum_j w_j * x_j / sum_j w_j
# ----------------------------------------------------------------------------
def _knn_interp_kernel(pts_ref, cents_ref, cfeat_ref, o_ref):
    pts = pts_ref[...]        # (TP, 3)  points of this tile (this batch)
    cts = cents_ref[...]      # (3, M)   this batch's centroids, coord-major
    tp = pts.shape[0]
    m = cts.shape[1]

    # Lane-dense pairwise squared distances: unroll the 3 coordinates and
    # accumulate into a single (TP, M) f32 tile (no (TP, M, 3) intermediate).
    d2 = jnp.zeros((tp, m), jnp.float32)
    for k in range(3):
        dk = pts[:, k:k + 1] - cts[k:k + 1, :]        # (TP, 1) - (1, M)
        d2 = d2 + dk * dk

    # Top-3 selection with one lane-min per neighbor: pack (distance, column)
    # into a single sortable int32 key.  Non-negative f32 bit patterns are
    # monotone as int32; clearing the low index bits and OR-ing in the column
    # makes keys unique per row and breaks ties toward the smaller index.
    col = lax.broadcasted_iota(jnp.int32, (tp, m), 1)
    idx_bits = max(1, (m - 1).bit_length())
    key = (pltpu.bitcast(d2, jnp.int32)
           & jnp.int32(~((1 << idx_bits) - 1))) | col

    int_max = jnp.int32(2 ** 31 - 1)
    sel = jnp.zeros((tp, m), jnp.bool_)
    work = key
    for _ in range(3):                                # k = 3 nearest
        kmin = jnp.min(work, axis=1, keepdims=True)   # single lane reduce
        hit = work == kmin                            # exactly one per row
        sel = jnp.logical_or(sel, hit)
        work = jnp.where(hit, int_max, work)

    # Inverse-squared-distance weights of the selected neighbors only.
    w = jnp.where(sel, 1.0 / jnp.maximum(d2, jnp.float32(1e-16)),
                  jnp.float32(0.0))                   # (TP, M)

    # Dense MXU contraction against this batch's centroid features (per-batch
    # M is small; a 3-index gather is only worthwhile for very large M).
    num = jnp.dot(w, cfeat_ref[...], preferred_element_type=jnp.float32)
    den = jnp.sum(w, axis=1, keepdims=True)           # (TP, 1)
    o_ref[...] = num * pl.reciprocal(den)             # EUP reciprocal + mul


def knn_interpolate(pts3, cents_t, cfeat3):
    """pts3 (B,N,3), cents_t (B,3,M), cfeat3 (B,M,Cin) -> (B,N,Cin)."""
    B, N, _ = pts3.shape
    M = cents_t.shape[2]
    cin = cfeat3.shape[2]
    # 256-row cap keeps the (TILE_P, M) workspaces inside v7x's smaller VMEM
    # while still amortizing per-grid-step overhead on v5e/v6e.
    tile_p = _pick_tile(N, (256, 128, 64, 32, 16, 8))
    grid = (B, N // tile_p)
    return pl.pallas_call(
        _knn_interp_kernel,
        out_shape=jax.ShapeDtypeStruct((B, N, cin), jnp.float32),
        grid=grid,
        in_specs=[
            pl.BlockSpec((None, tile_p, 3), lambda b, i: (b, i, 0)),
            pl.BlockSpec((None, 3, M), lambda b, i: (b, 0, 0)),
            pl.BlockSpec((None, M, cin), lambda b, i: (b, 0, 0)),
        ],
        out_specs=pl.BlockSpec((None, tile_p, cin), lambda b, i: (b, i, 0)),
        compiler_params=pltpu.CompilerParams(
            dimension_semantics=("parallel", "parallel")),
    )(pts3, cents_t, cfeat3)


# ----------------------------------------------------------------------------
# Kernel 2: unit_pointNet, channels-first, concat fused via split w1.
#   Pass 1 (stats): per-channel sum / sum-of-squares of conv1's output.
#   Pass 2 (main):  conv1 (BN folded into weights) -> ReLU -> conv2.
# ----------------------------------------------------------------------------
def _pn_stats_kernel(pf_ref, it_ref, w1s_ref, w1i_ref, b1_ref,
                     sum_ref, sq_ref):
    h = (jnp.dot(w1s_ref[...], pf_ref[...], preferred_element_type=jnp.float32)
         + jnp.dot(w1i_ref[...], it_ref[...], preferred_element_type=jnp.float32)
         + b1_ref[...])                               # (Cout, TILE_N)

    @pl.when(jnp.logical_and(pl.program_id(0) == 0, pl.program_id(1) == 0))
    def _():
        sum_ref[...] = jnp.zeros_like(sum_ref)
        sq_ref[...] = jnp.zeros_like(sq_ref)

    sum_ref[...] += jnp.sum(h, axis=1, keepdims=True)
    sq_ref[...] += jnp.sum(h * h, axis=1, keepdims=True)


def _pn_main_kernel(pf_ref, it_ref, w1s_ref, w1i_ref, b1_ref, w2_ref, b2_ref,
                    o_ref):
    h = (jnp.dot(w1s_ref[...], pf_ref[...], preferred_element_type=jnp.float32)
         + jnp.dot(w1i_ref[...], it_ref[...], preferred_element_type=jnp.float32)
         + b1_ref[...])                               # BN already folded in
    h = jnp.maximum(h, jnp.float32(0.0))              # ReLU
    o_ref[...] = (jnp.dot(w2_ref[...], h, preferred_element_type=jnp.float32)
                  + b2_ref[...])


def _pn_in_specs(skip, cin, cout, tile_n, with_w2):
    specs = [
        pl.BlockSpec((None, skip, tile_n), lambda b, i: (b, 0, i)),
        pl.BlockSpec((None, cin, tile_n), lambda b, i: (b, 0, i)),
        pl.BlockSpec((cout, skip), lambda b, i: (0, 0)),
        pl.BlockSpec((cout, cin), lambda b, i: (0, 0)),
        pl.BlockSpec((cout, 1), lambda b, i: (0, 0)),
    ]
    if with_w2:
        specs += [
            pl.BlockSpec((cout, cout), lambda b, i: (0, 0)),
            pl.BlockSpec((cout, 1), lambda b, i: (0, 0)),
        ]
    return specs


def pointnet_stats(pf, interp_v, w1s, w1i, b1col, tile_n):
    B, skip, N = pf.shape
    cin = interp_v.shape[1]
    cout = w1s.shape[0]
    return pl.pallas_call(
        _pn_stats_kernel,
        out_shape=(jax.ShapeDtypeStruct((cout, 1), jnp.float32),
                   jax.ShapeDtypeStruct((cout, 1), jnp.float32)),
        grid=(B, N // tile_n),
        in_specs=_pn_in_specs(skip, cin, cout, tile_n, with_w2=False),
        out_specs=(pl.BlockSpec((cout, 1), lambda b, i: (0, 0)),
                   pl.BlockSpec((cout, 1), lambda b, i: (0, 0))),
        compiler_params=pltpu.CompilerParams(
            dimension_semantics=("arbitrary", "arbitrary")),
    )(pf, interp_v, w1s, w1i, b1col)


def pointnet_main(pf, interp_v, w1s_f, w1i_f, b1_f, w2, b2col, tile_n):
    B, skip, N = pf.shape
    cin = interp_v.shape[1]
    cout = w1s_f.shape[0]
    return pl.pallas_call(
        _pn_main_kernel,
        out_shape=jax.ShapeDtypeStruct((B, cout, N), jnp.float32),
        grid=(B, N // tile_n),
        in_specs=_pn_in_specs(skip, cin, cout, tile_n, with_w2=True),
        out_specs=pl.BlockSpec((None, cout, tile_n), lambda b, i: (b, 0, i)),
        compiler_params=pltpu.CompilerParams(
            dimension_semantics=("parallel", "parallel")),
    )(pf, interp_v, w1s_f, w1i_f, b1_f, w2, b2col)


# ----------------------------------------------------------------------------
# Parameter init (deterministic, matches nn.init.xavier_uniform_ / zeros_)
# ----------------------------------------------------------------------------
def init_params(key, input_channels, output_channels, skip_channels):
    c_total = input_channels + skip_channels
    k1, k2 = jax.random.split(key)

    def xavier(k, fan_out, fan_in):
        bound = (6.0 / (fan_in + fan_out)) ** 0.5
        return jax.random.uniform(k, (fan_out, fan_in), jnp.float32,
                                  minval=-bound, maxval=bound)

    return {
        "w1": xavier(k1, output_channels, c_total),       # Conv1d kernel-size 1
        "b1": jnp.zeros((output_channels,), jnp.float32),
        "bn_gamma": jnp.ones((output_channels,), jnp.float32),
        "bn_beta": jnp.zeros((output_channels,), jnp.float32),
        "w2": xavier(k2, output_channels, output_channels),
        "b2": jnp.zeros((output_channels,), jnp.float32),
    }


# ----------------------------------------------------------------------------
# Full forward (reproduces the PyTorch module's reshape glue bug-for-bug)
# ----------------------------------------------------------------------------
@functools.partial(jax.jit, static_argnames=("input_channels", "batch_size"))
def feature_propagation_forward(points, point_features, centroids,
                                centroid_features, params,
                                *, input_channels, batch_size):
    B = batch_size
    N = points.shape[2]          # points.size(dim=2)
    M = centroids.shape[2]       # centroids.size(dim=2)
    cin = input_channels
    skip = point_features.shape[1]

    # Bug-for-bug flattening exactly as the PyTorch forward (row-major
    # reshapes of channels-first tensors).  Flat row r of points.reshape(-1,3)
    # belongs entirely to batch r // N, so regrouping per batch for blocking
    # is exact and replaces the cross-batch mask.
    pts3 = points.reshape(B, N, 3)                    # == reshape(-1,3) rows
    cents3 = centroids.reshape(B, M, 3)
    cfeat3 = centroid_features.reshape(B, M, cin)
    cents_t = jnp.transpose(cents3, (0, 2, 1))        # (B, 3, M), tiny

    interp = knn_interpolate(pts3, cents_t, cfeat3)   # (B, N, Cin)

    # PyTorch: interpolated_features.view(B, Cin, -1) on the flat (B*N, Cin)
    # result (channel/position interleave, bug-for-bug).  Row-major reshape,
    # no data movement.
    interp_v = interp.reshape(B, cin, N)

    # torch.cat((point_features, interp_v), dim=1) + the 1x1 convs are fused
    # into the pointnet kernels by splitting w1 -> the concatenated (B, Ct, N)
    # activation and the channel-last transpose are never materialized.
    w1 = params["w1"]
    b1 = params["b1"].reshape(-1, 1)
    w1s, w1i = w1[:, :skip], w1[:, skip:]

    tile_n = _pick_tile(N, (512, 256, 128))

    # Pass 1: BatchNorm1d training-mode batch statistics of conv1's output,
    # per channel over all B*N positions (biased variance).
    s_sum, s_sq = pointnet_stats(point_features, interp_v, w1s, w1i, b1, tile_n)
    count = jnp.float32(B * N)
    mean = s_sum / count
    var = jnp.maximum(s_sq / count - mean * mean, 0.0)   # guard f32 cancellation
    scale = params["bn_gamma"].reshape(-1, 1) * lax.rsqrt(var + jnp.float32(1e-5))
    shift = params["bn_beta"].reshape(-1, 1) - mean * scale

    # Fold BN into conv1:  (w1 @ x + b1 - mean) * scale + beta
    #                   == (w1 * scale) @ x + (b1 * scale + shift)
    w1s_f, w1i_f = w1s * scale, w1i * scale
    b1_f = b1 * scale + shift

    # Pass 2: fused conv1(+BN) -> ReLU -> conv2, streamed over (B, N) tiles,
    # writing the (B, Cout, N) output directly.
    out = pointnet_main(point_features, interp_v, w1s_f, w1i_f, b1_f,
                        params["w2"], params["b2"].reshape(-1, 1), tile_n)
    return out


if __name__ == "__main__":
    B = 2
    INPUT_CHANNELS = 4     # centroid feature channels
    SKIP_CHANNELS = 4      # point feature channels
    OUTPUT_CHANNELS = 8
    N = 16                 # points per batch
    M = 8                  # centroids per batch

    key = jax.random.PRNGKey(0)
    kp, kpf, kc, kcf, kw = jax.random.split(key, 5)

    points = jax.random.normal(kp, (B, 3, N), jnp.float32)
    point_features = jax.random.normal(kpf, (B, SKIP_CHANNELS, N), jnp.float32)
    centroids = jax.random.normal(kc, (B, 3, M), jnp.float32)
    centroid_features = jax.random.normal(kcf, (B, INPUT_CHANNELS, M), jnp.float32)

    params = init_params(kw, INPUT_CHANNELS, OUTPUT_CHANNELS, SKIP_CHANNELS)

    out = feature_propagation_forward(points, point_features, centroids,
                                      centroid_features, params,
                                      input_channels=INPUT_CHANNELS,
                                      batch_size=B)
    out = jax.block_until_ready(out)
    assert out.shape == (B, OUTPUT_CHANNELS, N)
    assert out.dtype == jnp.float32
    print("KERNEL_OK")
</pallas_src>

<mosaic_0001>
module attributes {stable_mosaic.version = 11 : i64} {
  func.func @_pn_stats_kernel(%arg0: i32, %arg1: i32, %arg2: memref<1x4x16xf32, #tpu.memory_space<vmem>>, %arg3: memref<1x4x16xf32, #tpu.memory_space<vmem>>, %arg4: memref<8x4xf32, #tpu.memory_space<vmem>>, %arg5: memref<8x4xf32, #tpu.memory_space<vmem>>, %arg6: memref<8x1xf32, #tpu.memory_space<vmem>>, %arg7: memref<8x1xf32, #tpu.memory_space<vmem>>, %arg8: memref<8x1xf32, #tpu.memory_space<vmem>>) attributes {dimension_semantics = [#tpu.dimension_semantics<arbitrary>, #tpu.dimension_semantics<arbitrary>], iteration_bounds = array<i64: 2, 1>, scalar_prefetch = 0 : i64, scratch_operands = 0 : i64, tpu.core_type = #tpu.core_type<tc>, window_params = [{transform_indices = @transform_0, window_bounds = array<i64: 1, 4, 16>}, {transform_indices = @transform_1, window_bounds = array<i64: 1, 4, 16>}, {pipeline_mode = #tpu.pipeline_mode<synchronous>, transform_indices = @transform_2, window_bounds = array<i64: 8, 4>}, {pipeline_mode = #tpu.pipeline_mode<synchronous>, transform_indices = @transform_3, window_bounds = array<i64: 8, 4>}, {pipeline_mode = #tpu.pipeline_mode<synchronous>, transform_indices = @transform_4, window_bounds = array<i64: 8, 1>}, {pipeline_mode = #tpu.pipeline_mode<synchronous>, transform_indices = @transform_5, window_bounds = array<i64: 8, 1>}, {pipeline_mode = #tpu.pipeline_mode<synchronous>, transform_indices = @transform_6, window_bounds = array<i64: 8, 1>}]} {
    %c0 = arith.constant 0 : index
    %c0_0 = arith.constant 0 : index
    %0 = vector.load %arg4[%c0, %c0_0] : memref<8x4xf32, #tpu.memory_space<vmem>>, vector<8x4xf32>
    %c0_1 = arith.constant 0 : index
    %c0_2 = arith.constant 0 : index
    %c0_3 = arith.constant 0 : index
    %1 = vector.load %arg2[%c0_1, %c0_2, %c0_3] : memref<1x4x16xf32, #tpu.memory_space<vmem>>, vector<1x4x16xf32>
    %2 = vector.shape_cast %1 : vector<1x4x16xf32> to vector<4x16xf32>
    %cst = arith.constant dense<0.000000e+00> : vector<8x16xf32>
    %3 = tpu.matmul %0, %2, %cst {dimension_numbers = #tpu.dot_dimension_numbers<[1], [0], [0], [1], [0, 0, 1, 1], [], []>} : vector<8x4xf32>, vector<4x16xf32>, vector<8x16xf32> -> vector<8x16xf32>
    %c0_4 = arith.constant 0 : index
    %c0_5 = arith.constant 0 : index
    %4 = vector.load %arg5[%c0_4, %c0_5] : memref<8x4xf32, #tpu.memory_space<vmem>>, vector<8x4xf32>
    %c0_6 = arith.constant 0 : index
    %c0_7 = arith.constant 0 : index
    %c0_8 = arith.constant 0 : index
    %5 = vector.load %arg3[%c0_6, %c0_7, %c0_8] : memref<1x4x16xf32, #tpu.memory_space<vmem>>, vector<1x4x16xf32>
    %6 = vector.shape_cast %5 : vector<1x4x16xf32> to vector<4x16xf32>
    %cst_9 = arith.constant dense<0.000000e+00> : vector<8x16xf32>
    %7 = tpu.matmul %4, %6, %cst_9 {dimension_numbers = #tpu.dot_dimension_numbers<[1], [0], [0], [1], [0, 0, 1, 1], [], []>} : vector<8x4xf32>, vector<4x16xf32>, vector<8x16xf32> -> vector<8x16xf32>
    %8 = arith.addf %3, %7 : vector<8x16xf32>
    %c0_10 = arith.constant 0 : index
    %c0_11 = arith.constant 0 : index
    %9 = vector.load %arg6[%c0_10, %c0_11] : memref<8x1xf32, #tpu.memory_space<vmem>>, vector<8x1xf32>
    %10 = vector.broadcast %9 : vector<8x1xf32> to vector<8x16xf32>
    %11 = arith.addf %8, %10 : vector<8x16xf32>
    %c0_i32 = arith.constant 0 : i32
    %12 = arith.cmpi eq, %arg0, %c0_i32 : i32
    %c0_i32_12 = arith.constant 0 : i32
    %13 = arith.cmpi eq, %arg1, %c0_i32_12 : i32
    %14 = arith.andi %12, %13 : i1
    %15 = arith.extui %14 : i1 to i32
    %c0_i32_13 = arith.constant 0 : i32
    %16 = arith.cmpi ne, %15, %c0_i32_13 : i32
    scf.if %16 {
      %cst_24 = arith.constant 0.000000e+00 : f32
      %28 = vector.broadcast %cst_24 : f32 to vector<8x1xf32>
      %c0_25 = arith.constant 0 : index
      %c0_26 = arith.constant 0 : index
      %29 = vector.load %arg7[%c0_25, %c0_26] : memref<8x1xf32, #tpu.memory_space<vmem>>, vector<8x1xf32>
      tpu.vector_store %arg7[%c0_25, %c0_26], %28 {strides = array<i32>} : memref<8x1xf32, #tpu.memory_space<vmem>>, vector<8x1xf32>,
      %cst_27 = arith.constant 0.000000e+00 : f32
      %30 = vector.broadcast %cst_27 : f32 to vector<8x1xf32>
      %c0_28 = arith.constant 0 : index
      %c0_29 = arith.constant 0 : index
      %31 = vector.load %arg8[%c0_28, %c0_29] : memref<8x1xf32, #tpu.memory_space<vmem>>, vector<8x1xf32>
      tpu.vector_store %arg8[%c0_28, %c0_29], %30 {strides = array<i32>} : memref<8x1xf32, #tpu.memory_space<vmem>>, vector<8x1xf32>,
    } else {
    }
    %c0_14 = arith.constant 0 : index
    %c0_15 = arith.constant 0 : index
    %17 = vector.load %arg7[%c0_14, %c0_15] : memref<8x1xf32, #tpu.memory_space<vmem>>, vector<8x1xf32>
    %cst_16 = arith.constant dense<0.000000e+00> : vector<8xf32>
    %18 = vector.multi_reduction <add>, %11, %cst_16 [1] : vector<8x16xf32> to vector<8xf32>
    %19 = vector.shape_cast %18 : vector<8xf32> to vector<8x1xf32>
    %20 = arith.addf %17, %19 : vector<8x1xf32>
    %c0_17 = arith.constant 0 : index
    %c0_18 = arith.constant 0 : index
    %21 = vector.load %arg7[%c0_17, %c0_18] : memref<8x1xf32, #tpu.memory_space<vmem>>, vector<8x1xf32>
    tpu.vector_store %arg7[%c0_17, %c0_18], %20 {strides = array<i32>} : memref<8x1xf32, #tpu.memory_space<vmem>>, vector<8x1xf32>,
    %c0_19 = arith.constant 0 : index
    %c0_20 = arith.constant 0 : index
    %22 = vector.load %arg8[%c0_19, %c0_20] : memref<8x1xf32, #tpu.memory_space<vmem>>, vector<8x1xf32>
    %23 = arith.mulf %11, %11 : vector<8x16xf32>
    %cst_21 = arith.constant dense<0.000000e+00> : vector<8xf32>
    %24 = vector.multi_reduction <add>, %23, %cst_21 [1] : vector<8x16xf32> to vector<8xf32>
    %25 = vector.shape_cast %24 : vector<8xf32> to vector<8x1xf32>
    %26 = arith.addf %22, %25 : vector<8x1xf32>
    %c0_22 = arith.constant 0 : index
    %c0_23 = arith.constant 0 : index
    %27 = vector.load %arg8[%c0_22, %c0_23] : memref<8x1xf32, #tpu.memory_space<vmem>>, vector<8x1xf32>
    tpu.vector_store %arg8[%c0_22, %c0_23], %26 {strides = array<i32>} : memref<8x1xf32, #tpu.memory_space<vmem>>, vector<8x1xf32>,
    return
  }
  func.func @transform_0(%arg0: i32, %arg1: i32) -> (i32, i32, i32) {
    %c0_i32 = arith.constant 0 : i32
    %c0_i32_0 = arith.constant 0 : i32
    return %arg0, %c0_i32, %arg1 : i32, i32, i32
  }
  func.func @transform_1(%arg0: i32, %arg1: i32) -> (i32, i32, i32) {
    %c0_i32 = arith.constant 0 : i32
    %c0_i32_0 = arith.constant 0 : i32
    return %arg0, %c0_i32, %arg1 : i32, i32, i32
  }
  func.func @transform_2(%arg0: i32, %arg1: i32) -> (i32, i32) {
    %c0_i32 = arith.constant 0 : i32
    %c0_i32_0 = arith.constant 0 : i32
    %c0_i32_1 = arith.constant 0 : i32
    return %c0_i32, %c0_i32_0 : i32, i32
  }
  func.func @transform_3(%arg0: i32, %arg1: i32) -> (i32, i32) {
    %c0_i32 = arith.constant 0 : i32
    %c0_i32_0 = arith.constant 0 : i32
    %c0_i32_1 = arith.constant 0 : i32
    return %c0_i32, %c0_i32_0 : i32, i32
  }
  func.func @transform_4(%arg0: i32, %arg1: i32) -> (i32, i32) {
    %c0_i32 = arith.constant 0 : i32
    %c0_i32_0 = arith.constant 0 : i32
    %c0_i32_1 = arith.constant 0 : i32
    return %c0_i32, %c0_i32_0 : i32, i32
  }
  func.func @transform_5(%arg0: i32, %arg1: i32) -> (i32, i32) {
    %c0_i32 = arith.constant 0 : i32
    %c0_i32_0 = arith.constant 0 : i32
    %c0_i32_1 = arith.constant 0 : i32
    return %c0_i32, %c0_i32_0 : i32, i32
  }
  func.func @transform_6(%arg0: i32, %arg1: i32) -> (i32, i32) {
    %c0_i32 = arith.constant 0 : i32
    %c0_i32_0 = arith.constant 0 : i32
    %c0_i32_1 = arith.constant 0 : i32
    return %c0_i32, %c0_i32_0 : i32, i32
  }
}

module attributes {stable_mosaic.version = 11 : i64} {
  func.func @_pn_main_kernel(%arg0: i32, %arg1: i32, %arg2: memref<1x4x16xf32, #tpu.memory_space<vmem>>, %arg3: memref<1x4x16xf32, #tpu.memory_space<vmem>>, %arg4: memref<8x4xf32, #tpu.memory_space<vmem>>, %arg5: memref<8x4xf32, #tpu.memory_space<vmem>>, %arg6: memref<8x1xf32, #tpu.memory_space<vmem>>, %arg7: memref<8x8xf32, #tpu.memory_space<vmem>>, %arg8: memref<8x1xf32, #tpu.memory_space<vmem>>, %arg9: memref<1x8x16xf32, #tpu.memory_space<vmem>>) attributes {dimension_semantics = [#tpu.dimension_semantics<parallel>, #tpu.dimension_semantics<parallel>], iteration_bounds = array<i64: 2, 1>, scalar_prefetch = 0 : i64, scratch_operands = 0 : i64, tpu.core_type = #tpu.core_type<tc>, window_params = [{transform_indices = @transform_0, window_bounds = array<i64: 1, 4, 16>}, {transform_indices = @transform_1, window_bounds = array<i64: 1, 4, 16>}, {pipeline_mode = #tpu.pipeline_mode<synchronous>, transform_indices = @transform_2, window_bounds = array<i64: 8, 4>}, {pipeline_mode = #tpu.pipeline_mode<synchronous>, transform_indices = @transform_3, window_bounds = array<i64: 8, 4>}, {pipeline_mode = #tpu.pipeline_mode<synchronous>, transform_indices = @transform_4, window_bounds = array<i64: 8, 1>}, {pipeline_mode = #tpu.pipeline_mode<synchronous>, transform_indices = @transform_5, window_bounds = array<i64: 8, 8>}, {pipeline_mode = #tpu.pipeline_mode<synchronous>, transform_indices = @transform_6, window_bounds = array<i64: 8, 1>}, {transform_indices = @transform_7, window_bounds = array<i64: 1, 8, 16>}]} {
    %c0 = arith.constant 0 : index
    %c0_0 = arith.constant 0 : index
    %0 = vector.load %arg4[%c0, %c0_0] : memref<8x4xf32, #tpu.memory_space<vmem>>, vector<8x4xf32>
    %c0_1 = arith.constant 0 : index
    %c0_2 = arith.constant 0 : index
    %c0_3 = arith.constant 0 : index
    %1 = vector.load %arg2[%c0_1, %c0_2, %c0_3] : memref<1x4x16xf32, #tpu.memory_space<vmem>>, vector<1x4x16xf32>
    %2 = vector.shape_cast %1 : vector<1x4x16xf32> to vector<4x16xf32>
    %cst = arith.constant dense<0.000000e+00> : vector<8x16xf32>
    %3 = tpu.matmul %0, %2, %cst {dimension_numbers = #tpu.dot_dimension_numbers<[1], [0], [0], [1], [0, 0, 1, 1], [], []>} : vector<8x4xf32>, vector<4x16xf32>, vector<8x16xf32> -> vector<8x16xf32>
    %c0_4 = arith.constant 0 : index
    %c0_5 = arith.constant 0 : index
    %4 = vector.load %arg5[%c0_4, %c0_5] : memref<8x4xf32, #tpu.memory_space<vmem>>, vector<8x4xf32>
    %c0_6 = arith.constant 0 : index
    %c0_7 = arith.constant 0 : index
    %c0_8 = arith.constant 0 : index
    %5 = vector.load %arg3[%c0_6, %c0_7, %c0_8] : memref<1x4x16xf32, #tpu.memory_space<vmem>>, vector<1x4x16xf32>
    %6 = vector.shape_cast %5 : vector<1x4x16xf32> to vector<4x16xf32>
    %cst_9 = arith.constant dense<0.000000e+00> : vector<8x16xf32>
    %7 = tpu.matmul %4, %6, %cst_9 {dimension_numbers = #tpu.dot_dimension_numbers<[1], [0], [0], [1], [0, 0, 1, 1], [], []>} : vector<8x4xf32>, vector<4x16xf32>, vector<8x16xf32> -> vector<8x16xf32>
    %8 = arith.addf %3, %7 : vector<8x16xf32>
    %c0_10 = arith.constant 0 : index
    %c0_11 = arith.constant 0 : index
    %9 = vector.load %arg6[%c0_10, %c0_11] : memref<8x1xf32, #tpu.memory_space<vmem>>, vector<8x1xf32>
    %10 = vector.broadcast %9 : vector<8x1xf32> to vector<8x16xf32>
    %11 = arith.addf %8, %10 : vector<8x16xf32>
    %cst_12 = arith.constant 0.000000e+00 : f32
    %12 = vector.broadcast %cst_12 : f32 to vector<8x16xf32>
    %13 = arith.maximumf %11, %12 : vector<8x16xf32>
    %c0_13 = arith.constant 0 : index
    %c0_14 = arith.constant 0 : index
    %14 = vector.load %arg7[%c0_13, %c0_14] : memref<8x8xf32, #tpu.memory_space<vmem>>, vector<8x8xf32>
    %cst_15 = arith.constant dense<0.000000e+00> : vector<8x16xf32>
    %15 = tpu.matmul %14, %13, %cst_15 {dimension_numbers = #tpu.dot_dimension_numbers<[1], [0], [0], [1], [0, 0, 1, 1], [], []>} : vector<8x8xf32>, vector<8x16xf32>, vector<8x16xf32> -> vector<8x16xf32>
    %c0_16 = arith.constant 0 : index
    %c0_17 = arith.constant 0 : index
    %16 = vector.load %arg8[%c0_16, %c0_17] : memref<8x1xf32, #tpu.memory_space<vmem>>, vector<8x1xf32>
    %17 = vector.broadcast %16 : vector<8x1xf32> to vector<8x16xf32>
    %18 = arith.addf %15, %17 : vector<8x16xf32>
    %c0_18 = arith.constant 0 : index
    %c0_19 = arith.constant 0 : index
    %c0_20 = arith.constant 0 : index
    %19 = vector.load %arg9[%c0_18, %c0_19, %c0_20] : memref<1x8x16xf32, #tpu.memory_space<vmem>>, vector<1x8x16xf32>
    %20 = vector.shape_cast %19 : vector<1x8x16xf32> to vector<8x16xf32>
    %21 = vector.shape_cast %18 : vector<8x16xf32> to vector<1x8x16xf32>
    tpu.vector_store %arg9[%c0_18, %c0_19, %c0_20], %21 {strides = array<i32>} : memref<1x8x16xf32, #tpu.memory_space<vmem>>, vector<1x8x16xf32>,
    return
  }
  func.func @transform_0(%arg0: i32, %arg1: i32) -> (i32, i32, i32) {
    %c0_i32 = arith.constant 0 : i32
    %c0_i32_0 = arith.constant 0 : i32
    return %arg0, %c0_i32, %arg1 : i32, i32, i32
  }
  func.func @transform_1(%arg0: i32, %arg1: i32) -> (i32, i32, i32) {
    %c0_i32 = arith.constant 0 : i32
    %c0_i32_0 = arith.constant 0 : i32
    return %arg0, %c0_i32, %arg1 : i32, i32, i32
  }
  func.func @transform_2(%arg0: i32, %arg1: i32) -> (i32, i32) {
    %c0_i32 = arith.constant 0 : i32
    %c0_i32_0 = arith.constant 0 : i32
    %c0_i32_1 = arith.constant 0 : i32
    return %c0_i32, %c0_i32_0 : i32, i32
  }
  func.func @transform_3(%arg0: i32, %arg1: i32) -> (i32, i32) {
    %c0_i32 = arith.constant 0 : i32
    %c0_i32_0 = arith.constant 0 : i32
    %c0_i32_1 = arith.constant 0 : i32
    return %c0_i32, %c0_i32_0 : i32, i32
  }
  func.func @transform_4(%arg0: i32, %arg1: i32) -> (i32, i32) {
    %c0_i32 = arith.constant 0 : i32
    %c0_i32_0 = arith.constant 0 : i32
    %c0_i32_1 = arith.constant 0 : i32
    return %c0_i32, %c0_i32_0 : i32, i32
  }
  func.func @transform_5(%arg0: i32, %arg1: i32) -> (i32, i32) {
    %c0_i32 = arith.constant 0 : i32
    %c0_i32_0 = arith.constant 0 : i32
    %c0_i32_1 = arith.constant 0 : i32
    return %c0_i32, %c0_i32_0 : i32, i32
  }
  func.func @transform_6(%arg0: i32, %arg1: i32) -> (i32, i32) {
    %c0_i32 = arith.constant 0 : i32
    %c0_i32_0 = arith.constant 0 : i32
    %c0_i32_1 = arith.constant 0 : i32
    return %c0_i32, %c0_i32_0 : i32, i32
  }
  func.func @transform_7(%arg0: i32, %arg1: i32) -> (i32, i32, i32) {
    %c0_i32 = arith.constant 0 : i32
    %c0_i32_0 = arith.constant 0 : i32
    return %arg0, %c0_i32, %arg1 : i32, i32, i32
  }
}

module attributes {stable_mosaic.version = 11 : i64} {
  func.func @_knn_interp_kernel(%arg0: i32, %arg1: i32, %arg2: memref<1x16x3xf32, #tpu.memory_space<vmem>>, %arg3: memref<1x3x8xf32, #tpu.memory_space<vmem>>, %arg4: memref<1x8x4xf32, #tpu.memory_space<vmem>>, %arg5: memref<1x16x4xf32, #tpu.memory_space<vmem>>) attributes {dimension_semantics = [#tpu.dimension_semantics<parallel>, #tpu.dimension_semantics<parallel>], iteration_bounds = array<i64: 2, 1>, scalar_prefetch = 0 : i64, scratch_operands = 0 : i64, tpu.core_type = #tpu.core_type<tc>, window_params = [{transform_indices = @transform_0, window_bounds = array<i64: 1, 16, 3>}, {transform_indices = @transform_1, window_bounds = array<i64: 1, 3, 8>}, {transform_indices = @transform_2, window_bounds = array<i64: 1, 8, 4>}, {transform_indices = @transform_3, window_bounds = array<i64: 1, 16, 4>}]} {
    %c0 = arith.constant 0 : index
    %c0_0 = arith.constant 0 : index
    %c0_1 = arith.constant 0 : index
    %0 = vector.load %arg2[%c0, %c0_0, %c0_1] : memref<1x16x3xf32, #tpu.memory_space<vmem>>, vector<1x16x3xf32>
    %1 = vector.shape_cast %0 : vector<1x16x3xf32> to vector<16x3xf32>
    %c0_2 = arith.constant 0 : index
    %c0_3 = arith.constant 0 : index
    %c0_4 = arith.constant 0 : index
    %2 = vector.load %arg3[%c0_2, %c0_3, %c0_4] : memref<1x3x8xf32, #tpu.memory_space<vmem>>, vector<1x3x8xf32>
    %3 = vector.shape_cast %2 : vector<1x3x8xf32> to vector<3x8xf32>
    %cst = arith.constant 0.000000e+00 : f32
    %4 = vector.broadcast %cst : f32 to vector<16x8xf32>
    %5 = vector.extract_strided_slice %1 {offsets = [0, 0], sizes = [16, 1], strides = [1, 1]} : vector<16x3xf32> to vector<16x1xf32>
    %6 = vector.extract_strided_slice %3 {offsets = [0, 0], sizes = [1, 8], strides = [1, 1]} : vector<3x8xf32> to vector<1x8xf32>
    %7 = vector.broadcast %5 : vector<16x1xf32> to vector<16x8xf32>
    %8 = vector.broadcast %6 : vector<1x8xf32> to vector<16x8xf32>
    %9 = arith.subf %7, %8 : vector<16x8xf32>
    %10 = arith.mulf %9, %9 : vector<16x8xf32>
    %11 = arith.addf %4, %10 : vector<16x8xf32>
    %12 = vector.extract_strided_slice %1 {offsets = [0, 1], sizes = [16, 1], strides = [1, 1]} : vector<16x3xf32> to vector<16x1xf32>
    %13 = vector.extract_strided_slice %3 {offsets = [1, 0], sizes = [1, 8], strides = [1, 1]} : vector<3x8xf32> to vector<1x8xf32>
    %14 = vector.broadcast %12 : vector<16x1xf32> to vector<16x8xf32>
    %15 = vector.broadcast %13 : vector<1x8xf32> to vector<16x8xf32>
    %16 = arith.subf %14, %15 : vector<16x8xf32>
    %17 = arith.mulf %16, %16 : vector<16x8xf32>
    %18 = arith.addf %11, %17 : vector<16x8xf32>
    %19 = vector.extract_strided_slice %1 {offsets = [0, 2], sizes = [16, 1], strides = [1, 1]} : vector<16x3xf32> to vector<16x1xf32>
    %20 = vector.extract_strided_slice %3 {offsets = [2, 0], sizes = [1, 8], strides = [1, 1]} : vector<3x8xf32> to vector<1x8xf32>
    %21 = vector.broadcast %19 : vector<16x1xf32> to vector<16x8xf32>
    %22 = vector.broadcast %20 : vector<1x8xf32> to vector<16x8xf32>
    %23 = arith.subf %21, %22 : vector<16x8xf32>
    %24 = arith.mulf %23, %23 : vector<16x8xf32>
    %25 = arith.addf %18, %24 : vector<16x8xf32>
    %26 = tpu.iota {dimensions = array<i32: 1>} : vector<16x8xi32>
    %27 = tpu.bitcast %25 : vector<16x8xf32> -> vector<16x8xi32>
    %c-8_i32 = arith.constant -8 : i32
    %28 = vector.broadcast %c-8_i32 : i32 to vector<16x8xi32>
    %29 = arith.andi %27, %28 : vector<16x8xi32>
    %30 = arith.ori %29, %26 : vector<16x8xi32>
    %false = arith.constant false
    %31 = vector.broadcast %false : i1 to vector<16x8xi1>
    %cst_5 = arith.constant dense<2147483647> : vector<16xi32>
    %32 = vector.multi_reduction <minsi>, %30, %cst_5 [1] : vector<16x8xi32> to vector<16xi32>
    %33 = vector.shape_cast %32 : vector<16xi32> to vector<16x1xi32>
    %34 = vector.broadcast %33 : vector<16x1xi32> to vector<16x8xi32>
    %35 = arith.cmpi eq, %30, %34 : vector<16x8xi32>
    %36 = arith.ori %31, %35 : vector<16x8xi1>
    %c2147483647_i32 = arith.constant 2147483647 : i32
    %37 = vector.broadcast %c2147483647_i32 : i32 to vector<16x8xi32>
    %38 = arith.select %35, %37, %30 : vector<16x8xi1>, vector<16x8xi32>
    %cst_6 = arith.constant dense<2147483647> : vector<16xi32>
    %39 = vector.multi_reduction <minsi>, %38, %cst_6 [1] : vector<16x8xi32> to vector<16xi32>
    %40 = vector.shape_cast %39 : vector<16xi32> to vector<16x1xi32>
    %41 = vector.broadcast %40 : vector<16x1xi32> to vector<16x8xi32>
    %42 = arith.cmpi eq, %38, %41 : vector<16x8xi32>
    %43 = arith.ori %36, %42 : vector<16x8xi1>
    %c2147483647_i32_7 = arith.constant 2147483647 : i32
    %44 = vector.broadcast %c2147483647_i32_7 : i32 to vector<16x8xi32>
    %45 = arith.select %42, %44, %38 : vector<16x8xi1>, vector<16x8xi32>
    %cst_8 = arith.constant dense<2147483647> : vector<16xi32>
    %46 = vector.multi_reduction <minsi>, %45, %cst_8 [1] : vector<16x8xi32> to vector<16xi32>
    %47 = vector.shape_cast %46 : vector<16xi32> to vector<16x1xi32>
    %48 = vector.broadcast %47 : vector<16x1xi32> to vector<16x8xi32>
    %49 = arith.cmpi eq, %45, %48 : vector<16x8xi32>
    %50 = arith.ori %43, %49 : vector<16x8xi1>
    %cst_9 = arith.constant 1.000000e-16 : f32
    %51 = vector.broadcast %cst_9 : f32 to vector<16x8xf32>
    %52 = arith.maximumf %25, %51 : vector<16x8xf32>
    %cst_10 = arith.constant 1.000000e+00 : f32
    %53 = vector.broadcast %cst_10 : f32 to vector<16x8xf32>
    %54 = arith.divf %53, %52 : vector<16x8xf32>
    %cst_11 = arith.constant 0.000000e+00 : f32
    %55 = vector.broadcast %cst_11 : f32 to vector<16x8xf32>
    %56 = arith.select %50, %54, %55 : vector<16x8xi1>, vector<16x8xf32>
    %c0_12 = arith.constant 0 : index
    %c0_13 = arith.constant 0 : index
    %c0_14 = arith.constant 0 : index
    %57 = vector.load %arg4[%c0_12, %c0_13, %c0_14] : memref<1x8x4xf32, #tpu.memory_space<vmem>>, vector<1x8x4xf32>
    %58 = vector.shape_cast %57 : vector<1x8x4xf32> to vector<8x4xf32>
    %cst_15 = arith.constant dense<0.000000e+00> : vector<16x4xf32>
    %59 = tpu.matmul %56, %58, %cst_15 {dimension_numbers = #tpu.dot_dimension_numbers<[1], [0], [0], [1], [0, 0, 1, 1], [], []>} : vector<16x8xf32>, vector<8x4xf32>, vector<16x4xf32> -> vector<16x4xf32>
    %cst_16 = arith.constant dense<0.000000e+00> : vector<16xf32>
    %60 = vector.multi_reduction <add>, %56, %cst_16 [1] : vector<16x8xf32> to vector<16xf32>
    %61 = vector.shape_cast %60 : vector<16xf32> to vector<16x1xf32>
    %62 = tpu.reciprocal %61 : vector<16x1xf32> -> vector<16x1xf32>
    %63 = vector.broadcast %62 : vector<16x1xf32> to vector<16x4xf32>
    %64 = arith.mulf %59, %63 : vector<16x4xf32>
    %c0_17 = arith.constant 0 : index
    %c0_18 = arith.constant 0 : index
    %c0_19 = arith.constant 0 : index
    %65 = vector.load %arg5[%c0_17, %c0_18, %c0_19] : memref<1x16x4xf32, #tpu.memory_space<vmem>>, vector<1x16x4xf32>
    %66 = vector.shape_cast %65 : vector<1x16x4xf32> to vector<16x4xf32>
    %67 = vector.shape_cast %64 : vector<16x4xf32> to vector<1x16x4xf32>
    tpu.vector_store %arg5[%c0_17, %c0_18, %c0_19], %67 {strides = array<i32>} : memref<1x16x4xf32, #tpu.memory_space<vmem>>, vector<1x16x4xf32>,
    return
  }
  func.func @transform_0(%arg0: i32, %arg1: i32) -> (i32, i32, i32) {
    %c0_i32 = arith.constant 0 : i32
    %c0_i32_0 = arith.constant 0 : i32
    return %arg0, %arg1, %c0_i32 : i32, i32, i32
  }
  func.func @transform_1(%arg0: i32, %arg1: i32) -> (i32, i32, i32) {
    %c0_i32 = arith.constant 0 : i32
    %c0_i32_0 = arith.constant 0 : i32
    %c0_i32_1 = arith.constant 0 : i32
    return %arg0, %c0_i32, %c0_i32_0 : i32, i32, i32
  }
  func.func @transform_2(%arg0: i32, %arg1: i32) -> (i32, i32, i32) {
    %c0_i32 = arith.constant 0 : i32
    %c0_i32_0 = arith.constant 0 : i32
    %c0_i32_1 = arith.constant 0 : i32
    return %arg0, %c0_i32, %c0_i32_0 : i32, i32, i32
  }
  func.func @transform_3(%arg0: i32, %arg1: i32) -> (i32, i32, i32) {
    %c0_i32 = arith.constant 0 : i32
    %c0_i32_0 = arith.constant 0 : i32
    return %arg0, %arg1, %c0_i32 : i32, i32, i32
  }
}

</mosaic_0001>

<bundles_post_ra>
// kernel: feature_propagation_forward.3
= control target key start
LH: loop header
LB: loop body
LE: loop exit
PB: predicated region body
PF: predicated region fallthrough
CT: control target
= control target key end

     0   :  { %s743_s12 = smov 0   ;;  %s745_s13 = smov 0   ;;  %s855_s0 = inlined_call_operand.vmem [shape: f32[2,16,3], index: 0, kind: input, shape index: {}]   ;;  %s856_s1 = inlined_call_operand.vmem [shape: f32[2,3,8], index: 1, kind: input, shape index: {}]   ;;  %s857_s2 = inlined_call_operand.vmem [shape: f32[2,8,4], index: 2, kind: input, shape index: {}]   ;;  %s858_s3 = inlined_call_operand.vmem [shape: f32[2,16,4], index: 3, kind: output, shape index: {}]  }
   0x1   :  { %s747_s14 = smov 0  }
   0x2 LB: > { %s25_s15 = sadd.s32 1, %s714_s13  ;;  %p634_p0 = scmp.ge.s32.totalorder %s718_s14, 1  ;;  %s718_s14 = sphi %s747_s14, %s13_s14   ;;  %s714_s13 = sphi %s745_s13, %s860_s13   ;;  %s710_s12 = sphi %s743_s12, %s859_s12  }
   0x3   : > { %p27_p1 = scmp.ge.s32.totalorder %s25_s15, 2  ;;  %p176_p2 = scmp.lt.s32.totalorder %s718_s14, 3 }
   0x5   : > { %s862_s15 = smov (%p27_p1, %s25_s15), 0  ;;  %p177_p3 = pnand %p634_p0, %p176_p2 }
   0x6   : > { %p217_p4 = scmp.lt.s32.totalorder (!%p177_p3), %s710_s12, 1 }
   0x7   : > { %180 = sbr.rel (%p177_p3) target bundleno = 1227 (0x4cb), region = 32 }
   0xc   : > { %v720_v0 = vmov 0   ;;  %s864_s12 = smov (!%p217_p4, %s710_s12), 1  ;;  %v721_v3 = vmov 1   ;;  %v722_v4 = vmov 2   ;;  %v257_v5 = vlaneseq }
   0xd   : > { %684 = vset.pattern.permute.xlu1 %v720_v0  ;;  %682 = vset.pattern.permute.xlu0 %v720_v0  ;;  %s645_s16 = sshll.u32 %s864_s12, 4  ;;  %s637_s20 = sshll.u32 %s864_s12, 2  ;;  %vm311_vm0 = vcmask 64512  }
   0xe   : > { %s224_s19 = scalar_lea.vmem %s855_s0, %s645_s16  ;;  %v258_v6 = vshrl.u32 %v257_v5, 7  ;;  %s229_s23 = scalar_lea.vmem %s856_s1, %s637_s20  ;;  %v304_v34 = vand.u32 127, %v257_v5 }
   0xf   : > { %v245_v1 = vld [vmem:[%s224_s19 + $0x8] sm:$0xff]  ;;  %v244_v2 = vld [vmem:[%s224_s19] sm:$0xff]  ;;  %s638_s24 = sshll.u32 %s864_s12, 3  ;;  %s242_s30 = scalar_lea.vmem %s858_s3, %s645_s16 }
  0x10   : > { %254 = vperm.xlu1 %684, %v245_v1   ;;  %249 = vperm.xlu0 %682, %v244_v2   ;;  %v277_v7 = vsub.s32 1, %v258_v6  ;;  %v259_v8 = vsub.s32 0, %v258_v6  ;;  %v246_v9 = vld [vmem:[%s229_s23] sm:$0x7]  ;;  %v295_v14 = vsub.s32 2, %v258_v6  ;;  %s233_s27 = scalar_lea.vmem %s857_s2, %s638_s24 }
  0x12   : > { %v278_v12 = vrot.slane %v246_v9, %v277_v7  ;;  %v260_v13 = vrot.slane %v246_v9, %v259_v8  ;;  %v296_v21 = vrot.slane %v246_v9, %v295_v14 }
  0x14   : > { %685 = vset.pattern.permute.xlu1 %v721_v3  ;;  %683 = vset.pattern.permute.xlu0 %v721_v3 }
  0x15   : > { %272 = vperm.xlu1 %685, %v245_v1   ;;  %268 = vperm.xlu0 %683, %v244_v2  }
  0x19   : > { %686 = vset.pattern.permute.xlu1 %v722_v4  ;;  %687 = vset.pattern.permute.xlu0 %v722_v4 }
  0x1a   : > { %286 = vperm.xlu1 %686, %v244_v2   ;;  %290 = vperm.xlu0 %687, %v245_v1  }
  0x8b   : > { %v255_v10 = vpop.permute.xlu1 %254  ;;  %v250_v11 = vpop.permute.xlu0 %249 }
  0x8c   : > { %v262_v19 = vsub.f32 %v255_v10, %v260_v13  ;;  %v261_v20 = vsub.f32 %v250_v11, %v260_v13 }
  0x8e   : > { %v264_v26 = vmul.f32 %v262_v19, %v262_v19  ;;  %v263_v27 = vmul.f32 %v261_v20, %v261_v20 }
  0x90   : > { %v273_v15 = vpop.permute.xlu1 %272  ;;  %v269_v16 = vpop.permute.xlu0 %268 }
  0x91   : > { %v280_v17 = vsub.f32 %v273_v15, %v278_v12  ;;  %v279_v18 = vsub.f32 %v269_v16, %v278_v12 }
  0x93   : > { %v282_v22 = vmul.f32 %v280_v17, %v280_v17  ;;  %v281_v23 = vmul.f32 %v279_v18, %v279_v18 }
  0x95   : > { %v287_v24 = vpop.permute.xlu1 %286  ;;  %v291_v25 = vpop.permute.xlu0 %290  ;;  %v284_v30 = vadd.f32 %v282_v22, %v264_v26  ;;  %v283_v31 = vadd.f32 %v281_v23, %v263_v27 }
  0x96   : > { %v297_v28 = vsub.f32 %v287_v24, %v296_v21  ;;  %v298_v29 = vsub.f32 %v291_v25, %v296_v21 }
  0x98   : > { %v299_v32 = vmul.f32 %v297_v28, %v297_v28  ;;  %v300_v33 = vmul.f32 %v298_v29, %v298_v29 }
  0x9a   : > { %v773_v35 = vadd.f32 %v299_v32, %v283_v31  ;;  %v775_v36 = vadd.f32 %v300_v33, %v284_v30 }
  0x9c   : > { %v307_v37 = vand.u32 4294967288, %v773_v35  ;;  %v308_v38 = vand.u32 4294967288, %v775_v36 }
  0x9e   : > { %v779_v39 = vor.u32 %v307_v37, %v304_v34  ;;  %v781_v40 = vor.u32 %v308_v38, %v304_v34 }
  0xa0   : > { %v312_v41 = vsel %vm311_vm0, %v779_v39, 2147483647  ;;  %v327_v42 = vsel %vm311_vm0, %v781_v40, 2147483647 }
  0xa1   : > { %v314_v43 = vshra.s32 %v312_v41, 16  ;;  %v329_v44 = vshra.s32 %v327_v42, 16  ;;  %v313_v47 = vand.u32 65535, %v312_v41  ;;  %v328_v48 = vand.u32 65535, %v327_v42 }
  0xa3   : > { %v316_v45 = vcvt.s32.f32 %v314_v43  ;;  %v331_v46 = vcvt.s32.f32 %v329_v44  ;;  %v315_v51 = vcvt.s32.f32 %v313_v47  ;;  %v330_v52 = vcvt.s32.f32 %v328_v48  ;;  %v424_v47 = vld [vmem:[%s233_s27] sm:$0xff] }
  0xa4   : > { %650 = vmatprep.subr.mxu0 %v424_v47  ;;  %v416_v48 = vmax.f32 %v773_v35, 1e-16 }
  0xa5   : > { %317 = vmin.xlane.f32.xlu1 %v316_v45  ;;  %332 = vmin.xlane.f32.xlu0 %v331_v46 }
  0xa6   : > { %651 = vmatpush3.msra.mxu0 %v424_v47  ;;  %688 = vrcp.f32 %v416_v48 }
  0xb3   : > { %v689_v35 = vpop.eup %688 }
 0x12e   : > { %v318_v49 = vpop.xlane.xlu1 %317  ;;  %v333_v50 = vpop.xlane.xlu0 %332 }
 0x12f   : > { %vm319_vm1 = vcmp.eq.f32.partialorder %v316_v45, %v318_v49  ;;  %vm334_vm2 = vcmp.eq.f32.partialorder %v331_v46, %v333_v50  ;;  %v324_v55 = vcvt.f32.s32 %v318_v49  ;;  %v339_v56 = vcvt.f32.s32 %v333_v50 }
 0x130   : > { %v320_v53 = vsel %vm319_vm1, %v315_v51, inf  ;;  %v335_v54 = vsel %vm334_vm2, %v330_v52, inf  ;;  %v417_v49 = vmax.f32 %v775_v36, 1e-16  ;;  %vm516_vm2 = vcmask 31744  }
 0x131   : > { %321 = vmin.xlane.f32.xlu1 %v320_v53  ;;  %336 = vmin.xlane.f32.xlu0 %v335_v54  ;;  %v325_v59 = vshll.u32 %v324_v55, 16  ;;  %v340_v60 = vshll.u32 %v339_v56, 16 }
 0x132   : > { %690 = vrcp.f32 %v417_v49 }
 0x13f   : > { %v691_v36 = vpop.eup %690 }
 0x1ba   : > { %v322_v57 = vpop.xlane.xlu1 %321  ;;  %v337_v58 = vpop.xlane.xlu0 %336 }
 0x1bb   : > { %v323_v61 = vcvt.f32.s32 %v322_v57  ;;  %v338_v62 = vcvt.f32.s32 %v337_v58 }
 0x1bd   : > { %v787_v63 = vadd.s32 %v325_v59, %v323_v61  ;;  %v789_v0 = vadd.s32 %v340_v60, %v338_v62 }
 0x1bf   : > { %vm342_vm3 = vcmp.eq.s32.totalorder %v779_v39, %v787_v63  ;;  %vm343_vm4 = vcmp.eq.s32.totalorder %v781_v40, %v789_v0 }
 0x1c0   : > { %v799_v1 = vsel %vm342_vm3, 2147483647, %v779_v39  ;;  %v805_v2 = vsel %vm343_vm4, 2147483647, %v781_v40 }
 0x1c1   : > { %v346_v3 = vsel %vm311_vm0, %v799_v1, 2147483647  ;;  %v361_v4 = vsel %vm311_vm0, %v805_v2, 2147483647 }
 0x1c2   : > { %v348_v5 = vshra.s32 %v346_v3, 16  ;;  %v363_v6 = vshra.s32 %v361_v4, 16  ;;  %v347_v9 = vand.u32 65535, %v346_v3  ;;  %v362_v10 = vand.u32 65535, %v361_v4 }
 0x1c4   : > { %v350_v7 = vcvt.s32.f32 %v348_v5  ;;  %v365_v8 = vcvt.s32.f32 %v363_v6  ;;  %v349_v13 = vcvt.s32.f32 %v347_v9  ;;  %v364_v14 = vcvt.s32.f32 %v362_v10 }
 0x1c6   : > { %351 = vmin.xlane.f32.xlu1 %v350_v7  ;;  %366 = vmin.xlane.f32.xlu0 %v365_v8 }
 0x24f   : > { %v352_v11 = vpop.xlane.xlu1 %351  ;;  %v367_v12 = vpop.xlane.xlu0 %366 }
 0x250   : > { %vm353_vm5 = vcmp.eq.f32.partialorder %v350_v7, %v352_v11  ;;  %vm368_vm6 = vcmp.eq.f32.partialorder %v365_v8, %v367_v12  ;;  %v358_v17 = vcvt.f32.s32 %v352_v11  ;;  %v373_v18 = vcvt.f32.s32 %v367_v12 }
 0x251   : > { %v354_v15 = vsel %vm353_vm5, %v349_v13, inf  ;;  %v369_v16 = vsel %vm368_vm6, %v364_v14, inf }
 0x252   : > { %355 = vmin.xlane.f32.xlu1 %v354_v15  ;;  %370 = vmin.xlane.f32.xlu0 %v369_v16  ;;  %v359_v21 = vshll.u32 %v358_v17, 16  ;;  %v374_v22 = vshll.u32 %v373_v18, 16 }
 0x2db   : > { %v356_v19 = vpop.xlane.xlu1 %355  ;;  %v371_v20 = vpop.xlane.xlu0 %370 }
 0x2dc   : > { %v357_v23 = vcvt.f32.s32 %v356_v19  ;;  %v372_v24 = vcvt.f32.s32 %v371_v20 }
 0x2de   : > { %v360_v25 = vadd.s32 %v359_v21, %v357_v23  ;;  %v375_v26 = vadd.s32 %v374_v22, %v372_v24 }
 0x2e0   : > { %vm376_vm7 = vcmp.eq.s32.totalorder %v799_v1, %v360_v25  ;;  %vm377_vm8 = vcmp.eq.s32.totalorder %v805_v2, %v375_v26 }
 0x2e1   : > { %v380_v27 = vsel %vm376_vm7, 2147483647, %v799_v1  ;;  %v381_v28 = vsel %vm377_vm8, 2147483647, %v805_v2  ;;  %vm378_vm11 = vmor %vm342_vm3, %vm376_vm7 }
 0x2e2   : > { %v382_v29 = vsel %vm311_vm0, %v380_v27, 2147483647  ;;  %v397_v30 = vsel %vm311_vm0, %v381_v28, 2147483647  ;;  %vm379_vm13 = vmor %vm343_vm4, %vm377_vm8 }
 0x2e3   : > { %v384_v31 = vshra.s32 %v382_v29, 16  ;;  %v399_v32 = vshra.s32 %v397_v30, 16  ;;  %v383_v37 = vand.u32 65535, %v382_v29  ;;  %v398_v38 = vand.u32 65535, %v397_v30 }
 0x2e5   : > { %v386_v33 = vcvt.s32.f32 %v384_v31  ;;  %v401_v34 = vcvt.s32.f32 %v399_v32  ;;  %v385_v43 = vcvt.s32.f32 %v383_v37  ;;  %v400_v44 = vcvt.s32.f32 %v398_v38 }
 0x2e7   : > { %387 = vmin.xlane.f32.xlu1 %v386_v33  ;;  %402 = vmin.xlane.f32.xlu0 %v401_v34 }
 0x370   : > { %v388_v41 = vpop.xlane.xlu1 %387  ;;  %v403_v42 = vpop.xlane.xlu0 %402 }
 0x371   : > { %vm389_vm9 = vcmp.eq.f32.partialorder %v386_v33, %v388_v41  ;;  %vm404_vm10 = vcmp.eq.f32.partialorder %v401_v34, %v403_v42  ;;  %v394_v50 = vcvt.f32.s32 %v388_v41  ;;  %v409_v51 = vcvt.f32.s32 %v403_v42 }
 0x372   : > { %v390_v45 = vsel %vm389_vm9, %v385_v43, inf  ;;  %v405_v46 = vsel %vm404_vm10, %v400_v44, inf }
 0x373   : > { %391 = vmin.xlane.f32.xlu1 %v390_v45  ;;  %406 = vmin.xlane.f32.xlu0 %v405_v46  ;;  %v395_v54 = vshll.u32 %v394_v50, 16  ;;  %v410_v55 = vshll.u32 %v409_v51, 16 }
 0x3fc   : > { %v392_v52 = vpop.xlane.xlu1 %391  ;;  %v407_v53 = vpop.xlane.xlu0 %406 }
 0x3fd   : > { %v393_v56 = vcvt.f32.s32 %v392_v52  ;;  %v408_v57 = vcvt.f32.s32 %v407_v53 }
 0x3ff   : > { %v396_v58 = vadd.s32 %v395_v54, %v393_v56  ;;  %v411_v59 = vadd.s32 %v410_v55, %v408_v57 }
 0x401   : > { %vm412_vm12 = vcmp.eq.s32.totalorder %v380_v27, %v396_v58  ;;  %vm413_vm14 = vcmp.eq.s32.totalorder %v381_v28, %v411_v59 }
 0x402   : > { %vm414_vm15 = vmor %vm378_vm11, %vm412_vm12 }
 0x403   : > { %v422_v60 = vsel %vm414_vm15, %v689_v35, 0.0  ;;  %vm415_vm1 = vmor %vm379_vm13, %vm413_vm14 }
 0x404   : > { %652 = vmatprep.mubr.msk.f32.mxu0 %vm311_vm0, %v422_v60  ;;  %v506_v61 = vsel %vm311_vm0, %v422_v60, 0.0  ;;  %v423_v39 = vsel %vm415_vm1, %v691_v36, 0.0 }
 0x405   : > { %507 = vadd.xlane.f32.xlu1 %v506_v61  ;;  %v509_v62 = vsel %vm311_vm0, %v423_v39, 0.0  ;;  %653 = vmatmul.mubr.msk.f32.vlgmr.msra.gmra.mxu0 %vm311_vm0, %v423_v39 }
 0x406   : > { %510 = vadd.xlane.f32.xlu0 %v509_v62 }
 0x48e   : > { %v508_v63 = vpop.xlane.xlu1 %507 }
 0x48f   : > { %v511_v40 = vpop.xlane.xlu0 %510 }
 0x490   : > { %692 = vrcp.f32 %v511_v40 }
 0x491   : > { %694 = vrcp.f32 %v508_v63 }
 0x49d   : > { %v693_v0 = vpop.eup %692 }
 0x49e   : > { %v695_v3 = vpop.eup %694 }
 0x4c5   : > { %v654_v1 = vpop.f32.mrf.mxu0 }
 0x4c6   : > { %v515_v2 = vmul.f32 %v693_v0, %v654_v1 }
 0x4c7   : > { %v497_v4 = vpop.f32.mrf.mxu0 }
 0x4c8   : > { %518 = vst.msk [vmem:[%s242_s30 + $0x8] sm:$0xff] %vm516_vm2, %v515_v2  ;;  %v514_v5 = vmul.f32 %v695_v3, %v497_v4 }
 0x4ca   : > { %517 = vst.msk [vmem:[%s242_s30] sm:$0xff] %vm516_vm2, %v514_v5 }
 0x4cb PF: > { %s13_s14 = sadd.s32 1, %s718_s14   ;;  %s859_s12 = smov %s714_s13 }
 0x4cc   : > { %p10_p5 = scmp.ge.s32.totalorder %s13_s14, 4   ;;  %s860_s13 = smov %s862_s15 }
 0x4ce   :  { %12 = sbr.rel (!%p10_p5) target bundleno = 2 (0x2), region = 68 }

// kernel: feature_propagation_forward.4
= control target key start
LH: loop header
LB: loop body
LE: loop exit
PB: predicated region body
PF: predicated region fallthrough
CT: control target
= control target key end

     0   :  { %s652_s21 = smov 0   ;;  %s654_s22 = smov 0   ;;  %s717_s0 = inlined_call_operand.vmem [shape: f32[2,4,16], index: 0, kind: input, shape index: {}]   ;;  %s718_s1 = inlined_call_operand.vmem [shape: f32[2,4,16], index: 1, kind: input, shape index: {}]   ;;  %s719_s2 = inlined_call_operand.vmem [shape: f32[8,4], index: 2, kind: input, shape index: {}]   ;;  %s720_s3 = inlined_call_operand.vmem [shape: f32[8,4], index: 3, kind: input, shape index: {}]   ;;  %s721_s4 = inlined_call_operand.vmem [shape: f32[8,1], index: 4, kind: input, shape index: {}]   ;;  %s722_s5 = inlined_call_operand.vmem [shape: f32[8,1], index: 5, kind: output, shape index: {0}]   ;;  %s723_s6 = inlined_call_operand.vmem [shape: f32[8,1], index: 6, kind: output, shape index: {1}]  }
   0x1   :  { %s656_s23 = smov 0  }
   0x2 LB: > { %s29_s24 = sadd.s32 1, %s607_s22  ;;  %p535_p0 = scmp.ge.s32.totalorder %s611_s23, 1  ;;  %s611_s23 = sphi %s656_s23, %s17_s23   ;;  %s607_s22 = sphi %s654_s22, %s725_s22   ;;  %s603_s21 = sphi %s652_s21, %s724_s21  }
   0x3   : > { %p31_p1 = scmp.ge.s32.totalorder %s29_s24, 2  ;;  %p235_p2 = scmp.lt.s32.totalorder %s611_s23, 3 }
   0x5   : > { %s727_s24 = smov (%p31_p1, %s29_s24), 0  ;;  %p236_p3 = pnand %p535_p0, %p235_p2 }
   0x6   : > { %p269_p4 = scmp.lt.s32.totalorder (!%p236_p3), %s603_s21, 1  ;;  %p448_p5 = scmp.eq.s32.totalorder (!%p236_p3), %s603_s21, 0 }
   0x7   : > { %239 = sbr.rel (%p236_p3) target bundleno = 362 (0x16a), region = 40 }
   0xc   : > { %v613_v0 = vmov 0.0   ;;  %v441_v1 = vld [vmem:[%s721_s4] sm:$0xff]  ;;  %s270_s27 = scalar_select %p269_p4, %s603_s21, 1  ;;  %vm614_vm0 = vmmov 0   ;;  %v615_v2 = vmov 0   ;;  %vm291_vm1 = vcmask 1043456  }
   0xd   : > { %550 = vmatprep.subr.mxu0 %v613_v0  ;;  %555 = vmatprep.subr.mxu1 %v613_v0  ;;  %v285_v3 = vld [vmem:[%s720_s3] sm:$0xff]  ;;  %vm287_vm2 = vcmask 31744   ;;  %vm454_vm3 = vcmask (%p448_p5), 7168   ;;  %v616_v14 = vmov (%p448_p5), 0.0  }
   0xe   : > { %552 = vmatprep.mubr.msk.f32.mxu0 %vm614_vm0, %v613_v0  ;;  %557 = vmatprep.mubr.msk.f32.mxu1 %vm614_vm0, %v613_v0  ;;  %s536_s28 = sshll.u32 %s270_s27, 2  ;;  %v283_v4 = vld [vmem:[%s719_s2] sm:$0xff]  ;;  %455 = vst.msk [vmem:[%s722_s5] sm:$0xff] (%p448_p5), %vm454_vm3, %v616_v14  ;;  %456 = vst.msk [vmem:[%s723_s6] sm:$0xff] (%p448_p5), %vm454_vm3, %v616_v14 }
   0xf   : > { %588 = vset.pattern.permute.xlu0 %v615_v2  ;;  %s282_s7 = scalar_lea.vmem %s718_s1, %s536_s28  ;;  %s275_s10 = scalar_lea.vmem %s717_s0, %s536_s28 }
  0x10   : > { %444 = vperm.xlu0 %588, %v441_v1   ;;  %v286_v5 = vld [vmem:[%s282_s7] sm:$0xf] }
  0x11   : > { %v284_v6 = vld [vmem:[%s275_s10] sm:$0xf]  ;;  %551 = vmatpush3.msk.msra.mxu0 %vm291_vm1, %v286_v5 }
  0x12   : > { %556 = vmatpush3.msk.msra.mxu1 %vm291_vm1, %v284_v6  ;;  %553 = vmatmul.mubr.msk.f32.vlgmr.msra.gmra.mxu0 %vm287_vm2, %v285_v3 }
  0x13   : > { %558 = vmatmul.mubr.msk.f32.vlgmr.msra.gmra.mxu1 %vm287_vm2, %v283_v4 }
  0x8b   : > { %v445_v7 = vpop.permute.xlu0 %444 }
  0xd2   : > { %v361_v8 = vpop.f32.mrf.mxu0  ;;  %453 = sbr.rel (!%p448_p5) target bundleno = 215 (0xd7), region = 44 }
  0xd3   : > { %v437_v9 = vpop.f32.mrf.mxu1 }
  0xd4   : > { %v438_v10 = vadd.f32 %v437_v9, %v361_v8  ;;  %v554_v11 = vpop.f32.mrf.mxu0 }
  0xd5   : > { %v559_v12 = vpop.f32.mrf.mxu1 }
  0xd6   : > { %v447_v13 = vadd.f32 %v445_v7, %v438_v10 }
  0xd7 PF: > { %vm458_vm4 = vcmask 130048   ;;  %v457_v18 = vld [vmem:[%s722_s5] sm:$0xff]  ;;  %vm463_vm5 = vcmask 7168  }
  0xd8   : > { %v466_v15 = vmul.f32 %v447_v13, %v447_v13  ;;  %v459_v16 = vsel %vm458_vm4, %v447_v13, 0.0  ;;  %v465_v21 = vld [vmem:[%s723_s6] sm:$0xff] }
  0xd9   : > { %460 = vadd.xlane.f32.xlu0 %v459_v16 }
  0xda   : > { %v467_v17 = vsel %vm458_vm4, %v466_v15, 0.0 }
  0xdd   : > { %468 = vadd.xlane.f32.xlu0 %v467_v17 }
 0x162   : > { %v461_v19 = vpop.xlane.xlu0 %460 }
 0x163   : > { %v462_v20 = vadd.f32 %v461_v19, %v457_v18 }
 0x165   : > { %464 = vst.msk [vmem:[%s722_s5] sm:$0xff] %vm463_vm5, %v462_v20 }
 0x166   : > { %v469_v22 = vpop.xlane.xlu0 %468 }
 0x167   : > { %v470_v23 = vadd.f32 %v469_v22, %v465_v21 }
 0x169   : > { %471 = vst.msk [vmem:[%s723_s6] sm:$0xff] %vm463_vm5, %v470_v23 }
 0x16a PF: > { %s17_s23 = sadd.s32 1, %s611_s23   ;;  %s724_s21 = smov %s607_s22 }
 0x16b   : > { %p14_p6 = scmp.ge.s32.totalorder %s17_s23, 4   ;;  %s725_s22 = smov %s727_s24 }
 0x16d   :  { %16 = sbr.rel (!%p14_p6) target bundleno = 2 (0x2), region = 81 }

// kernel: feature_propagation_forward.5
= control target key start
LH: loop header
LB: loop body
LE: loop exit
PB: predicated region body
PF: predicated region fallthrough
CT: control target
= control target key end

     0   :  { %12 = vsyncpa [#allocation3], 0  ;;  %s1022_s0 = inlined_call_operand.vmem [shape: f32[2,4,16], index: 0, kind: input, shape index: {}]   ;;  %s1023_s1 = inlined_call_operand.vmem [shape: f32[2,4,16], index: 1, kind: input, shape index: {}]   ;;  %s1024_s2 = inlined_call_operand.vmem [shape: f32[8,4], index: 2, kind: input, shape index: {}]   ;;  %s1025_s3 = inlined_call_operand.vmem [shape: f32[8,4], index: 3, kind: input, shape index: {}]   ;;  %s1026_s4 = inlined_call_operand.vmem [shape: f32[8,1], index: 4, kind: input, shape index: {}]   ;;  %s1027_s5 = inlined_call_operand.vmem [shape: f32[8,8], index: 5, kind: input, shape index: {}]   ;;  %s1028_s6 = inlined_call_operand.vmem [shape: f32[8,1], index: 6, kind: input, shape index: {}]   ;;  %s1029_s7 = inlined_call_operand.hbm [shape: f32[2,8,16], index: 7, kind: output, shape index: {}]  }
   0x1   :  { %14 = vsyncpa [#allocation3 + $0x1], 0  ;;  %s896_s24 = smov 0   ;;  %s898_s25 = smov 0  }
   0x2   :  { %s900_s26 = smov 0   ;;  %s902_s27 = smov 0  }
   0x3   :  { %s904_s28 = smov 0   ;;  %s906_s29 = smov 0  }
   0x4 LB: > { %s677_s30 = sadd.s32 4294967295, %s850_s29   ;;  %s678_s8 = sadd.s32 4294967294, %s850_s29   ;;  %s850_s29 = sphi %s906_s29, %s20_s29   ;;  %s846_s28 = sphi %s904_s28, %s1036_s28   ;;  %s842_s27 = sphi %s902_s27, %s1035_s27   ;;  %s838_s26 = sphi %s900_s26, %s1034_s26   ;;  %s834_s25 = sphi %s898_s25, %s1033_s25   ;;  %s830_s24 = sphi %s896_s24, %s1032_s24  }
   0x5   : > { %s32_s9 = sadd.s32 1, %s846_s28  ;;  %s202_s10 = sadd.s32 1, %s838_s26 }
   0x6   : > { %p34_p0 = scmp.ge.s32.totalorder %s32_s9, 2  ;;  %p212_p1 = scmp.ne.s32.totalorder %s838_s26, %s834_s25 }
   0x7   : > { %p213_p2 = scmp.eq.s32.totalorder %s677_s30, 1  ;;  %p218_p3 = scmp.ne.s32.totalorder %s834_s25, %s830_s24 }
   0x8   : > { %s1038_s9 = smov (%p34_p0, %s32_s9), 0  ;;  %p219_p5 = scmp.eq.s32.totalorder %s678_s8, 1 }
   0x9   : > { %p936_p4 = por %p213_p2, %p212_p1  ;;  %s197_s12 = ssub.s32 %s846_s28, %s1038_s9 }
   0xa   : > { %p681_p6 = scmp.ge.s32.totalorder %s850_s29, 1  ;;  %p200_p7 = scmp.eq.s32.totalorder %s197_s12, 0 }
   0xb   : > { %p943_p8 = por %p219_p5, %p218_p3  ;;  %p272_p9 = scmp.lt.s32.totalorder %s850_s29, 3 }
   0xc   : > { %s949_s14 = scalar_select %p200_p7, %s838_s26, %s202_s10  }
   0xd   : > { %p273_p10 = pnand %p681_p6, %p272_p9 }
   0xe   : > { %p313_p11 = scmp.lt.s32.totalorder (!%p273_p10), %s842_s27, 1  ;;  %s310_s20 = sand.u32 (!%p273_p10), 1, %s834_s25  }
   0xf   : > { %276 = sbr.rel (%p273_p10) target bundleno = 435 (0x1b3), region = 48  ;;  %s691_s22 = sshll.u32 (!%p273_p10), %s842_s27, 7 }
  0x10   : > { %s982_s12 = scalar_lea.hbm (!%p273_p10), %s1029_s7, %s691_s22  ;;  %s577_s15 = scalar_lea.sflag (!%p273_p10), [#allocation3], %s310_s20 }
  0x14   : > { %v852_v0 = vmov 0.0   ;;  %v485_v1 = vld [vmem:[%s1026_s4] sm:$0xff]  ;;  %s314_s17 = scalar_select %p313_p11, %s842_s27, 1  ;;  %vm853_vm0 = vmmov 0   ;;  %v854_v2 = vmov 0   ;;  %vm335_vm1 = vcmask 1043456  }
  0x15   : > { %700 = vmatprep.subr.mxu0 %v852_v0  ;;  %705 = vmatprep.subr.mxu1 %v852_v0  ;;  %v329_v3 = vld [vmem:[%s1025_s3] sm:$0xff]  ;;  %vm331_vm2 = vcmask 31744   ;;  %vm500_vm3 = vcmask 64512   ;;  %vm574_vm4 = vcmask 130048   ;;  %s855_s27 = smov [#allocation2]  }
  0x16   : > { %702 = vmatprep.mubr.msk.f32.mxu0 %vm853_vm0, %v852_v0  ;;  %707 = vmatprep.mubr.msk.f32.mxu1 %vm853_vm0, %v852_v0  ;;  %s683_s18 = sshll.u32 %s314_s17, 2  ;;  %v327_v4 = vld [vmem:[%s1024_s2] sm:$0xff]  ;;  %s778_s17 = sshll.u32 %s855_s27, 4  ;;  %s779_s17 = int_to_ptr.vmem [resolvable:$false] %s778_s17 }
  0x17   : > { %773 = vset.pattern.permute.xlu0 %v854_v2  ;;  %s326_s21 = scalar_lea.vmem %s1023_s1, %s683_s18  ;;  %s319_s30 = scalar_lea.vmem %s1022_s0, %s683_s18  ;;  %v494_v7 = vld [vmem:[%s1028_s6] sm:$0xff] }
  0x18   : > { %488 = vperm.xlu0 %773, %v485_v1   ;;  %v330_v5 = vld [vmem:[%s326_s21] sm:$0xf]  ;;  %s682_s21 = sshll.u32 %s310_s20, 3  ;;  %s780_s18 = scalar_lea.vmem %s779_s17, 256 }
  0x19   : > { %v328_v6 = vld [vmem:[%s319_s30] sm:$0xf]  ;;  %701 = vmatpush3.msk.msra.mxu0 %vm335_vm1, %v330_v5  ;;  %s312_s23 = scalar_lea.vmem [#allocation2], %s682_s21 }
  0x1a   : > { %706 = vmatpush3.msk.msra.mxu1 %vm335_vm1, %v328_v6  ;;  %703 = vmatmul.mubr.msk.f32.vlgmr.msra.gmra.mxu0 %vm331_vm2, %v329_v3  ;;  %v493_v16 = vld [vmem:[%s1027_s5] sm:$0xff]  ;;  %s591_s30 = sshll.u32 %s312_s23, 4  ;;  %s592_s30 = int_to_ptr.vmem [resolvable:$true] %s591_s30 }
  0x1b   : > { %708 = vmatmul.mubr.msk.f32.vlgmr.msra.gmra.mxu1 %vm331_vm2, %v327_v4  ;;  %710 = vmatprep.subr.mxu0 %v852_v0  ;;  %s774_s16 = scalar_lea.vmem %s592_s30, 128  ;;  %p781_p1 = scmp.lt.s32.totalorder %s592_s30, %s779_s17 }
  0x1c   : > { %497 = vperm.xlu0 %773, %v494_v7   ;;  %712 = vmatprep.mubr.msk.f32.mxu0 %vm853_vm0, %v852_v0  ;;  %p775_p12 = scmp.ne.s32.totalorder %s592_s30, %s774_s16  ;;  %p782_p2 = scmp.lt.s32.totalorder %s780_s18, %s774_s16 }
  0x1e   : > { %p776_p13 = pnand %p775_p12, %p936_p4  ;;  %p783_p3 = por %p782_p2, %p781_p1 }
  0x20   : > { %p777_p0 = pneg %p776_p13 }
  0x22   : > { %p784_p5 = pnand %p783_p3, %p777_p0 }
  0x93   : > { %v489_v10 = vpop.permute.xlu0 %488 }
  0x97   : > { %v498_v17 = vpop.permute.xlu0 %497 }
  0xda   : > { %v405_v8 = vpop.f32.mrf.mxu0 }
  0xdb   : > { %v481_v9 = vpop.f32.mrf.mxu1 }
  0xdc   : > { %v482_v11 = vadd.f32 %v481_v9, %v405_v8  ;;  %v704_v12 = vpop.f32.mrf.mxu0 }
  0xdd   : > { %v709_v13 = vpop.f32.mrf.mxu1 }
  0xde   : > { %v491_v14 = vadd.f32 %v489_v10, %v482_v11 }
  0xe0   : > { %v492_v15 = vmax.f32 %v491_v14, 0.0 }
  0xe2   : > { %711 = vmatpush3.msra.mxu0 %v492_v15 }
  0xe3   : > { %713 = vmatmul.mubr.msk.f32.vlgmr.msra.gmra.mxu0 %vm500_vm3, %v493_v16 }
 0x1a3   : > { %v570_v18 = vpop.f32.mrf.mxu0 }
 0x1a4   : > { %v571_v19 = vadd.f32 %v570_v18, %v498_v17 }
 0x1a5   : > { %v714_v20 = vpop.f32.mrf.mxu0 }
 0x1a6   : > { %575 = vst.msk [vmem:[%s312_s23] sm:$0xff] %vm574_vm4, %v571_v19 }
 0x1a7   : > { %787 = shalt.err (!%p784_p5)
}
 0x1a8   : > { %s788_s19 = scalar_lea.hbm %s982_s12, 128  ;;  %s792_s22 = scalar_lea.hbm %s1029_s7, 256 }
 0x1a9   : > { %p789_p6 = scmp.ne.s32.totalorder %s982_s12, %s788_s19  ;;  %p793_p10 = scmp.lt.s32.totalorder %s982_s12, %s1029_s7 }
 0x1aa   : > { %p794_p11 = scmp.lt.s32.totalorder %s792_s22, %s788_s19 }
 0x1ab   : > { %p790_p7 = pnand %p789_p6, %p936_p4 }
 0x1ac   : > { %p795_p12 = por %p794_p11, %p793_p10 }
 0x1ad   : > { %p791_p9 = pneg %p790_p7 }
 0x1af   : > { %p796_p13 = pnand %p795_p12, %p791_p9 }
 0x1b1   : > { %799 = shalt.err (!%p796_p13)
}
 0x1b2   : > { %715 = dma.vmem_to_hbm [thread:$0]  (%p936_p4), %s592_s30, 128, %s982_s12, %s577_s15  }
 0x1b3 PF: > { %p721_p0 = scmp.ge.s32.totalorder %s850_s29, 2  ;;  %s603_s10 = sand.u32 1, %s830_s24  }
 0x1b4   : > { %s604_s16 = scalar_lea.sflag [#allocation3], %s603_s10 }
 0x1b5   : > { %p718_p1 = pnand %p721_p0, %p943_p8 }
 0x1b7   : > { %p719_p2 = pneg %p718_p1 }
 0x1b9   : > { %825 = dma.done.wait (%p719_p2), %s604_s16, 128  }
 0x1ba   : > { %827 = vsyncadd (%p719_p2), %s604_s16, 4294967168  ;;  %s20_s29 = sadd.s32 1, %s850_s29   ;;  %s1032_s24 = smov %s834_s25 }
 0x1bb   : > { %p17_p3 = scmp.ge.s32.totalorder %s20_s29, 4   ;;  %s1033_s25 = smov %s838_s26 }
 0x1bc   : > { %s1034_s26 = smov %s949_s14  ;;  %s1035_s27 = smov %s846_s28 }
 0x1bd   : > { %s1036_s28 = smov %s1038_s9  ;;  %19 = sbr.rel (!%p17_p3) target bundleno = 4 (0x4), region = 86 }
 0x1c2   :  { %609 = vsyncpa [#allocation3], 1 }
 0x1c3   :  { %611 = vsyncpa [#allocation3 + $0x1], 1 }

</bundles_post_ra>
